<compile_context>
chip_gen: v7x
topology: tpu7x:2x2x1
jax: 0.10.0
libtpu: 0.0.40
codegen_flags: <defaults>
</compile_context>

<pallas_src>
import functools

import jax
import jax.numpy as jnp
import numpy as np
from jax import lax
from jax.experimental import pallas as pl
from jax.experimental.pallas import tpu as pltpu

_EPAD = 8             # zero rows before/after each flattened tile (only >=1 needed;
                      # 8 keeps the dj==0 (unshifted) slice starts sublane-aligned)
_DEF_TILE_ROWS = 1024  # default target conv-output rows per grid step (conservative
                       # so double-buffered tiles fit v7x's 64 MiB VMEM too)


def _make_kernel(tile_h, width, cin, cout_pad, inv_hw):
    m_tile = tile_h * width                       # conv output rows per grid step
    rows_blk = 2 * _EPAD + (tile_h + 2) * width   # rows of the padded input tile

    def kernel(x_ref, w_ref, b_ref, o_ref):
        # x_ref : (rows_blk, cin)     bf16  flattened halo tile of one image
        # w_ref : (9*cin, cout_pad)   bf16  im2col-flattened 3x3 conv weights
        # b_ref : (1, cout_pad)       f32   conv bias (lane padded)
        # o_ref : (1, 1, cout_pad)    f32   pooled features (resident across t)
        t = pl.program_id(1)

        @pl.when(t == 0)
        def _init():
            o_ref[...] = jnp.zeros_like(o_ref)

        x = x_ref[...]                                           # (rows_blk, cin) bf16

        # Hoisted left/right-column masks: a dj=-1 tap only ever wraps onto
        # padded-column (W-1) elements and a dj=+1 tap only onto padded-column 0,
        # so two masked copies of the tile cover all six edge taps (2 selects).
        pcol = (lax.broadcasted_iota(jnp.int32, (rows_blk, 1), 0) - _EPAD) % width
        x_l = jnp.where(pcol != width - 1, x, 0)                 # used by dj == 0 taps
        x_r = jnp.where(pcol != 0, x, 0)                         # used by dj == 2 taps
        srcs = (x_l, x, x_r)

        # In-kernel im2col: 9 statically-shifted row slices concatenated along the
        # lane axis -> ONE MXU matmul with K = 9*cin (internal accumulation).
        cols = []
        for di in range(3):
            for dj in range(3):
                off = _EPAD + di * width + (dj - 1)              # static offsets
                cols.append(srcs[dj][off:off + m_tile, :])
        xcol = jnp.concatenate(cols, axis=1)                     # (m_tile, 9*cin) bf16

        y = jnp.dot(xcol, w_ref[...], preferred_element_type=jnp.float32)
        y = jnp.maximum(y + b_ref[...], 0.0)                     # (m_tile, cout_pad) f32

        # Pool this tile: plain column sum accumulated into the resident output
        # block across the ("arbitrary") t axis; scale by 1/(H*W) once at the end.
        o_ref[...] += jnp.sum(y, axis=0, keepdims=True).reshape(o_ref.shape)

        @pl.when(t == pl.num_programs(1) - 1)
        def _finish():
            o_ref[...] = o_ref[...] * inv_hw

    return kernel


def _pick_tile_h(height, width, tile_h):
    if tile_h is None:
        tile_h = max(1, min(height, _DEF_TILE_ROWS // max(1, width)))
    tile_h = max(1, min(tile_h, height))
    while height % tile_h:
        tile_h -= 1
    return tile_h


@functools.partial(jax.jit, static_argnames=("tile_h",))
def _extract_features(images, weight, bias, tile_h=None):
    batch, cin, height, width = images.shape
    cout, cin_w, kh, kw = weight.shape
    assert cin_w == cin and kh == 3 and kw == 3

    # Lane padding: 128 keeps the v5e MXU full; when cout >= 256 pad to 256 so the
    # 256-wide v6e/v7x MXUs are not half-filled.
    quantum = 256 if cout >= 256 else 128
    cout_pad = ((cout + quantum - 1) // quantum) * quantum

    th = _pick_tile_h(height, width, tile_h)
    n_tiles = height // th
    rows_blk = 2 * _EPAD + (th + 2) * width

    # ---- x prep: NCHW -> NHWC, H zero-pad, per-tile halo copies, bf16 ----------
    x = jnp.transpose(images, (0, 2, 3, 1)).astype(jnp.bfloat16)     # (B,H,W,C)
    xp = jnp.pad(x, ((0, 0), (1, 1), (0, 0), (0, 0)))                # (B,H+2,W,C)
    x_tiles = jnp.stack(
        [xp[:, t * th:t * th + th + 2] for t in range(n_tiles)], axis=1
    )                                                                # (B,T,th+2,W,C)
    x_tiles = x_tiles.reshape(batch, n_tiles, (th + 2) * width, cin)
    x_tiles = jnp.pad(x_tiles, ((0, 0), (0, 0), (_EPAD, _EPAD), (0, 0)))

    # ---- weights / bias: PyTorch (Cout,Cin,3,3) -> (9*Cin, Cout_pad) bf16 ------
    w_flat = jnp.transpose(weight, (2, 3, 1, 0)).reshape(kh * kw * cin, cout)
    w_flat = jnp.pad(w_flat, ((0, 0), (0, cout_pad - cout))).astype(jnp.bfloat16)
    b_row = jnp.pad(bias.astype(jnp.float32),
                    (0, cout_pad - cout)).reshape(1, cout_pad)

    kernel = _make_kernel(th, width, cin, cout_pad, 1.0 / float(height * width))

    out = pl.pallas_call(
        kernel,
        out_shape=jax.ShapeDtypeStruct((batch, 1, cout_pad), jnp.float32),
        grid=(batch, n_tiles),
        in_specs=[
            pl.BlockSpec((None, None, rows_blk, cin), lambda b, t: (b, t, 0, 0)),
            pl.BlockSpec((kh * kw * cin, cout_pad), lambda b, t: (0, 0)),
            pl.BlockSpec((1, cout_pad), lambda b, t: (0, 0)),
        ],
        out_specs=pl.BlockSpec((1, 1, cout_pad), lambda b, t: (b, 0, 0)),
        compiler_params=pltpu.CompilerParams(
            dimension_semantics=("parallel", "arbitrary"),
            vmem_limit_bytes=48 * 1024 * 1024,
        ),
    )(x_tiles, w_flat, b_row)
    return out[:, 0, :cout]


def feature_extractor_forward(images, weight, bias, tile_h=None):
    """images: NCHW float32.  Returns features.shape (matching PyTorch forward)."""
    features = _extract_features(images, weight, bias, tile_h=tile_h)
    return features.shape, features


if __name__ == "__main__":
    key = jax.random.PRNGKey(0)
    k_img, k_w, k_b = jax.random.split(key, 3)

    B, C, H, W = 2, 4, 16, 16
    Cout, kh, kw = 32, 3, 3

    images = jax.random.normal(k_img, (B, C, H, W), dtype=jnp.float32)
    weight = jax.random.normal(k_w, (Cout, C, kh, kw), dtype=jnp.float32) * 0.1
    bias = jax.random.normal(k_b, (Cout,), dtype=jnp.float32) * 0.1

    # tile_h=8 -> 2 H-tiles per image, exercising the accumulate-across-t path.
    feat_shape, features = feature_extractor_forward(images, weight, bias, tile_h=8)
    features = jax.block_until_ready(features)   # test/benchmark sync only

    # Pure-JAX reference: conv(pad=1) + bias + ReLU + global average pool.
    ref = lax.conv_general_dilated(
        images, weight, window_strides=(1, 1), padding=((1, 1), (1, 1)),
        dimension_numbers=("NCHW", "OIHW", "NCHW"))
    ref = jnp.maximum(ref + bias[None, :, None, None], 0.0)
    ref = jnp.mean(ref, axis=(2, 3))                              # (B, Cout)

    np.testing.assert_allclose(np.asarray(features), np.asarray(ref),
                               rtol=2e-2, atol=2e-2)              # bf16 MXU operands
    assert feat_shape == (B, Cout)
    print("KERNEL_OK")
</pallas_src>

<mosaic_0001>
module attributes {stable_mosaic.version = 11 : i64} {
  func.func @kernel(%arg0: i32, %arg1: i32, %arg2: memref<1x1x176x4xbf16, #tpu.memory_space<vmem>>, %arg3: memref<36x128xbf16, #tpu.memory_space<vmem>>, %arg4: memref<1x128xf32, #tpu.memory_space<vmem>>, %arg5: memref<1x1x128xf32, #tpu.memory_space<vmem>>) attributes {dimension_semantics = [#tpu.dimension_semantics<parallel>, #tpu.dimension_semantics<arbitrary>], iteration_bounds = array<i64: 2, 2>, scalar_prefetch = 0 : i64, scratch_operands = 0 : i64, tpu.core_type = #tpu.core_type<tc>, window_params = [{transform_indices = @transform_0, window_bounds = array<i64: 1, 1, 176, 4>}, {pipeline_mode = #tpu.pipeline_mode<synchronous>, transform_indices = @transform_1, window_bounds = array<i64: 36, 128>}, {pipeline_mode = #tpu.pipeline_mode<synchronous>, transform_indices = @transform_2, window_bounds = array<i64: 1, 128>}, {transform_indices = @transform_3, window_bounds = array<i64: 1, 1, 128>}]} {
    %c0_i32 = arith.constant 0 : i32
    %0 = arith.cmpi eq, %arg1, %c0_i32 : i32
    %1 = arith.extui %0 : i1 to i32
    %c0_i32_0 = arith.constant 0 : i32
    %2 = arith.cmpi ne, %1, %c0_i32_0 : i32
    scf.if %2 {
      %cst_25 = arith.constant 0.000000e+00 : f32
      %64 = vector.broadcast %cst_25 : f32 to vector<1x1x128xf32>
      %c0_26 = arith.constant 0 : index
      %c0_27 = arith.constant 0 : index
      %c0_28 = arith.constant 0 : index
      %65 = vector.load %arg5[%c0_26, %c0_27, %c0_28] : memref<1x1x128xf32, #tpu.memory_space<vmem>>, vector<1x1x128xf32>
      tpu.vector_store %arg5[%c0_26, %c0_27, %c0_28], %64 {strides = array<i32>} : memref<1x1x128xf32, #tpu.memory_space<vmem>>, vector<1x1x128xf32>,
    } else {
    }
    %c0 = arith.constant 0 : index
    %c0_1 = arith.constant 0 : index
    %c0_2 = arith.constant 0 : index
    %c0_3 = arith.constant 0 : index
    %3 = vector.load %arg2[%c0, %c0_1, %c0_2, %c0_3] : memref<1x1x176x4xbf16, #tpu.memory_space<vmem>>, vector<1x1x176x4xbf16>
    %4 = vector.shape_cast %3 : vector<1x1x176x4xbf16> to vector<176x4xbf16>
    %5 = tpu.iota {dimensions = array<i32: 0>} : vector<176x1xi32>
    %c8_i32 = arith.constant 8 : i32
    %6 = vector.broadcast %c8_i32 : i32 to vector<176x1xi32>
    %7 = arith.subi %5, %6 : vector<176x1xi32>
    %c16_i32 = arith.constant 16 : i32
    %c0_i32_4 = arith.constant 0 : i32
    %8 = arith.cmpi eq, %c16_i32, %c0_i32_4 : i32
    %c1_i32 = arith.constant 1 : i32
    %9 = arith.select %8, %c1_i32, %c16_i32 : i32
    %10 = vector.broadcast %9 : i32 to vector<176x1xi32>
    %11 = arith.remsi %7, %10 : vector<176x1xi32>
    %c0_i32_5 = arith.constant 0 : i32
    %12 = vector.broadcast %c0_i32_5 : i32 to vector<176x1xi32>
    %13 = arith.cmpi ne, %11, %12 : vector<176x1xi32>
    %c0_i32_6 = arith.constant 0 : i32
    %14 = vector.broadcast %c0_i32_6 : i32 to vector<176x1xi32>
    %15 = arith.cmpi slt, %11, %14 : vector<176x1xi32>
    %c0_i32_7 = arith.constant 0 : i32
    %16 = arith.cmpi slt, %9, %c0_i32_7 : i32
    %17 = vector.broadcast %16 : i1 to vector<176x1xi1>
    %18 = vector.broadcast %17 : vector<176x1xi1> to vector<176x1xi1>
    %19 = arith.xori %15, %18 : vector<176x1xi1>
    %20 = arith.andi %19, %13 : vector<176x1xi1>
    %21 = vector.broadcast %9 : i32 to vector<176x1xi32>
    %22 = arith.addi %11, %21 : vector<176x1xi32>
    %23 = arith.select %20, %22, %11 : vector<176x1xi1>, vector<176x1xi32>
    %c15_i32 = arith.constant 15 : i32
    %24 = vector.broadcast %c15_i32 : i32 to vector<176x1xi32>
    %25 = arith.cmpi ne, %23, %24 : vector<176x1xi32>
    %c0_i32_8 = arith.constant 0 : i32
    %26 = arith.sitofp %c0_i32_8 : i32 to bf16
    %27 = vector.shape_cast %25 : vector<176x1xi1> to vector<176x1xi1>
    %28 = vector.broadcast %27 : vector<176x1xi1> to vector<176x4xi1>
    %29 = vector.broadcast %26 : bf16 to vector<176x4xbf16>
    %30 = arith.select %28, %4, %29 : vector<176x4xi1>, vector<176x4xbf16>
    %c0_i32_9 = arith.constant 0 : i32
    %31 = vector.broadcast %c0_i32_9 : i32 to vector<176x1xi32>
    %32 = arith.cmpi ne, %23, %31 : vector<176x1xi32>
    %c0_i32_10 = arith.constant 0 : i32
    %33 = arith.sitofp %c0_i32_10 : i32 to bf16
    %34 = vector.shape_cast %32 : vector<176x1xi1> to vector<176x1xi1>
    %35 = vector.broadcast %34 : vector<176x1xi1> to vector<176x4xi1>
    %36 = vector.broadcast %33 : bf16 to vector<176x4xbf16>
    %37 = arith.select %35, %4, %36 : vector<176x4xi1>, vector<176x4xbf16>
    %38 = vector.extract_strided_slice %30 {offsets = [7, 0], sizes = [128, 4], strides = [1, 1]} : vector<176x4xbf16> to vector<128x4xbf16>
    %39 = vector.extract_strided_slice %4 {offsets = [8, 0], sizes = [128, 4], strides = [1, 1]} : vector<176x4xbf16> to vector<128x4xbf16>
    %40 = vector.extract_strided_slice %37 {offsets = [9, 0], sizes = [128, 4], strides = [1, 1]} : vector<176x4xbf16> to vector<128x4xbf16>
    %41 = vector.extract_strided_slice %30 {offsets = [23, 0], sizes = [128, 4], strides = [1, 1]} : vector<176x4xbf16> to vector<128x4xbf16>
    %42 = vector.extract_strided_slice %4 {offsets = [24, 0], sizes = [128, 4], strides = [1, 1]} : vector<176x4xbf16> to vector<128x4xbf16>
    %43 = vector.extract_strided_slice %37 {offsets = [25, 0], sizes = [128, 4], strides = [1, 1]} : vector<176x4xbf16> to vector<128x4xbf16>
    %44 = vector.extract_strided_slice %30 {offsets = [39, 0], sizes = [128, 4], strides = [1, 1]} : vector<176x4xbf16> to vector<128x4xbf16>
    %45 = vector.extract_strided_slice %4 {offsets = [40, 0], sizes = [128, 4], strides = [1, 1]} : vector<176x4xbf16> to vector<128x4xbf16>
    %46 = vector.extract_strided_slice %37 {offsets = [41, 0], sizes = [128, 4], strides = [1, 1]} : vector<176x4xbf16> to vector<128x4xbf16>
    %47 = tpu.concatenate %38, %39, %40, %41, %42, %43, %44, %45, %46 in 1 : vector<128x4xbf16>, vector<128x4xbf16>, vector<128x4xbf16>, vector<128x4xbf16>, vector<128x4xbf16>, vector<128x4xbf16>, vector<128x4xbf16>, vector<128x4xbf16>, vector<128x4xbf16> -> vector<128x36xbf16>
    %c0_11 = arith.constant 0 : index
    %c0_12 = arith.constant 0 : index
    %48 = vector.load %arg3[%c0_11, %c0_12] : memref<36x128xbf16, #tpu.memory_space<vmem>>, vector<36x128xbf16>
    %cst = arith.constant dense<0.000000e+00> : vector<128x128xf32>
    %49 = tpu.matmul %47, %48, %cst {dimension_numbers = #tpu.dot_dimension_numbers<[1], [0], [0], [1], [0, 0, 1, 1], [], []>} : vector<128x36xbf16>, vector<36x128xbf16>, vector<128x128xf32> -> vector<128x128xf32>
    %c0_13 = arith.constant 0 : index
    %c0_14 = arith.constant 0 : index
    %50 = vector.load %arg4[%c0_13, %c0_14] : memref<1x128xf32, #tpu.memory_space<vmem>>, vector<1x128xf32>
    %51 = vector.broadcast %50 : vector<1x128xf32> to vector<128x128xf32>
    %52 = arith.addf %49, %51 : vector<128x128xf32>
    %cst_15 = arith.constant 0.000000e+00 : f32
    %53 = vector.broadcast %cst_15 : f32 to vector<128x128xf32>
    %54 = arith.maximumf %52, %53 : vector<128x128xf32>
    %c0_16 = arith.constant 0 : index
    %c0_17 = arith.constant 0 : index
    %c0_18 = arith.constant 0 : index
    %55 = vector.load %arg5[%c0_16, %c0_17, %c0_18] : memref<1x1x128xf32, #tpu.memory_space<vmem>>, vector<1x1x128xf32>
    %cst_19 = arith.constant dense<0.000000e+00> : vector<128xf32>
    %56 = vector.multi_reduction <add>, %54, %cst_19 [0] : vector<128x128xf32> to vector<128xf32>
    %57 = vector.shape_cast %56 : vector<128xf32> to vector<1x128xf32>
    %58 = vector.shape_cast %57 : vector<1x128xf32> to vector<1x1x128xf32>
    %59 = arith.addf %55, %58 : vector<1x1x128xf32>
    %c0_20 = arith.constant 0 : index
    %c0_21 = arith.constant 0 : index
    %c0_22 = arith.constant 0 : index
    %60 = vector.load %arg5[%c0_20, %c0_21, %c0_22] : memref<1x1x128xf32, #tpu.memory_space<vmem>>, vector<1x1x128xf32>
    tpu.vector_store %arg5[%c0_20, %c0_21, %c0_22], %59 {strides = array<i32>} : memref<1x1x128xf32, #tpu.memory_space<vmem>>, vector<1x1x128xf32>,
    %c1_i32_23 = arith.constant 1 : i32
    %61 = arith.cmpi eq, %arg1, %c1_i32_23 : i32
    %62 = arith.extui %61 : i1 to i32
    %c0_i32_24 = arith.constant 0 : i32
    %63 = arith.cmpi ne, %62, %c0_i32_24 : i32
    scf.if %63 {
      %c0_25 = arith.constant 0 : index
      %c0_26 = arith.constant 0 : index
      %c0_27 = arith.constant 0 : index
      %64 = vector.load %arg5[%c0_25, %c0_26, %c0_27] : memref<1x1x128xf32, #tpu.memory_space<vmem>>, vector<1x1x128xf32>
      %cst_28 = arith.constant 3.906250e-03 : f32
      %65 = vector.broadcast %cst_28 : f32 to vector<1x1x128xf32>
      %66 = arith.mulf %64, %65 : vector<1x1x128xf32>
      %c0_29 = arith.constant 0 : index
      %c0_30 = arith.constant 0 : index
      %c0_31 = arith.constant 0 : index
      %67 = vector.load %arg5[%c0_29, %c0_30, %c0_31] : memref<1x1x128xf32, #tpu.memory_space<vmem>>, vector<1x1x128xf32>
      tpu.vector_store %arg5[%c0_29, %c0_30, %c0_31], %66 {strides = array<i32>} : memref<1x1x128xf32, #tpu.memory_space<vmem>>, vector<1x1x128xf32>,
    } else {
    }
    return
  }
  func.func @transform_0(%arg0: i32, %arg1: i32) -> (i32, i32, i32, i32) {
    %c0_i32 = arith.constant 0 : i32
    %c0_i32_0 = arith.constant 0 : i32
    %c0_i32_1 = arith.constant 0 : i32
    return %arg0, %arg1, %c0_i32, %c0_i32_0 : i32, i32, i32, i32
  }
  func.func @transform_1(%arg0: i32, %arg1: i32) -> (i32, i32) {
    %c0_i32 = arith.constant 0 : i32
    %c0_i32_0 = arith.constant 0 : i32
    %c0_i32_1 = arith.constant 0 : i32
    return %c0_i32, %c0_i32_0 : i32, i32
  }
  func.func @transform_2(%arg0: i32, %arg1: i32) -> (i32, i32) {
    %c0_i32 = arith.constant 0 : i32
    %c0_i32_0 = arith.constant 0 : i32
    %c0_i32_1 = arith.constant 0 : i32
    return %c0_i32, %c0_i32_0 : i32, i32
  }
  func.func @transform_3(%arg0: i32, %arg1: i32) -> (i32, i32, i32) {
    %c0_i32 = arith.constant 0 : i32
    %c0_i32_0 = arith.constant 0 : i32
    %c0_i32_1 = arith.constant 0 : i32
    return %arg0, %c0_i32, %c0_i32_0 : i32, i32, i32
  }
}

</mosaic_0001>

<bundles_post_ra>
// kernel: _extract_features.1
= control target key start
LH: loop header
LB: loop body
LE: loop exit
PB: predicated region body
PF: predicated region fallthrough
CT: control target
= control target key end

     0   :  { %8 = vsyncpa [#allocation3], 0  ;;  %s2730_s0 = inlined_call_operand.vmem [shape: bf16[2,2,176,4], index: 0, kind: input, shape index: {}]   ;;  %s2731_s1 = inlined_call_operand.vmem [shape: bf16[36,128], index: 1, kind: input, shape index: {}]   ;;  %s2732_s2 = inlined_call_operand.vmem [shape: f32[1,128], index: 2, kind: input, shape index: {}]   ;;  %s2733_s3 = inlined_call_operand.hbm [shape: f32[2,1,128], index: 3, kind: output, shape index: {}]  }
   0x1   :  { %10 = vsyncpa [#allocation3 + $0x1], 0  ;;  %s2024_s12 = smov 0   ;;  %s2026_s13 = smov 0  }
   0x2   :  { %s2028_s14 = smov 0   ;;  %s2030_s15 = smov 0  }
   0x3   :  { %s2032_s16 = smov 0   ;;  %s2034_s17 = smov 0  }
   0x4   :  { %s2036_s18 = smov 0   ;;  %s2038_s19 = smov 0  }
   0x5 LB: > { %s1680_s20 = sadd.s32 4294967295, %s1991_s19   ;;  %s1681_s21 = sadd.s32 4294967294, %s1991_s19   ;;  %s1991_s19 = sphi %s2038_s19, %s16_s19   ;;  %s1987_s18 = sphi %s2036_s18, %s2752_s18   ;;  %s1983_s17 = sphi %s2034_s17, %s2751_s17   ;;  %s1979_s16 = sphi %s2032_s16, %s2750_s16   ;;  %s1975_s15 = sphi %s2030_s15, %s2749_s15   ;;  %s1971_s14 = sphi %s2028_s14, %s2748_s14   ;;  %s1967_s13 = sphi %s2026_s13, %s2747_s13   ;;  %s1963_s12 = sphi %s2024_s12, %s2746_s12  }
   0x6   : > { %s25_s22 = sadd.s32 1, %s1983_s17  ;;  %s28_s23 = sadd.s32 1, %s1987_s18 }
   0x7   : > { %p26_p0 = scmp.ge.s32.totalorder %s25_s22, 2  ;;  %p115_p1 = scmp.ne.s32.totalorder %s1971_s14, %s1967_s13 }
   0x8   : > { %p116_p2 = scmp.eq.s32.totalorder %s1680_s20, 3  ;;  %p121_p4 = scmp.ne.s32.totalorder %s1967_s13, %s1963_s12 }
   0x9   : > { %s2754_s22 = smov (%p26_p0, %s25_s22), 0  ;;  %s2756_s23 = smov (!%p26_p0, %s28_s23), %s1987_s18 }
   0xa   : > { %p2073_p3 = por %p116_p2, %p115_p1  ;;  %p30_p5 = scmp.ge.s32.totalorder %s2756_s23, 2 }
   0xb   : > { %p122_p6 = scmp.eq.s32.totalorder %s1681_s21, 3  ;;  %p1684_p7 = scmp.ge.s32.totalorder %s1991_s19, 1 }
   0xc   : > { %p158_p8 = scmp.lt.s32.totalorder %s1991_s19, 5  ;;  %s2758_s23 = smov (%p30_p5, %s2756_s23), 0 }
   0xd   : > { %p2083_p9 = por %p122_p6, %p121_p4  ;;  %s102_s26 = ssub.s32 %s1987_s18, %s2758_s23 }
   0xe   : > { %p159_p10 = pnand %p1684_p7, %p158_p8  ;;  %s105_s27 = sadd.s32 1, %s1971_s14 }
   0xf   : > { %p103_p11 = scmp.eq.s32.totalorder %s102_s26, 0  ;;  %s183_s29 = sand.u32 (!%p159_p10), 1, %s1967_s13  }
  0x10   : > { %162 = sbr.rel (%p159_p10) target bundleno = 582 (0x246), region = 32  ;;  %p185_p12 = scmp.lt.s32.totalorder (!%p159_p10), %s1979_s16, 1 }
  0x11   : > { %s2091_s28 = scalar_select %p103_p11, %s1971_s14, %s105_s27  }
  0x12   : > { %p187_p13 = scmp.lt.s32.totalorder (!%p159_p10), %s1975_s15, 1  ;;  %s2105_s20 = scalar_lea.vmem (!%p159_p10), [#allocation2], %s183_s29 }
  0x13   : > { %p1686_p0 = scmp.ne.s32.totalorder (!%p159_p10), %s1975_s15, 0 }
  0x17   : > { %s186_s30 = scalar_select %p185_p12, %s1979_s16, 1 }
  0x18   : > { %s188_s4 = scalar_select %p187_p13, %s1975_s15, 1 }
  0x19   : > { %s1802_s5 = smul.u32 44, %s186_s30  ;;  %v1993_v0 = vmov (!%p1686_p0), 0.0  }
  0x1a   : > { %s1801_s6 = smul.u32 22, %s188_s4  ;;  %199 = vst [vmem:[%s2105_s20] sm:$0x1] (!%p1686_p0), %v1993_v0 }
  0x1b   : > { %198 = sbr.rel (%p1686_p0) target bundleno = 34 (0x22), region = 36 }
  0x1c   : > { %s191_s7 = sadd.s32 %s1802_s5, %s1801_s6 }
  0x1d   : > { %s1685_s8 = sshll.u32 %s191_s7, 2 }
  0x1e   : > { %s2101_s11 = scalar_lea.vmem %s2730_s0, %s1685_s8 }
  0x22 PF: > { %v2110_v1 = vld [vmem:[%s2101_s11 + $0xc] sm:$0xf]  ;;  %v2113_v2 = vld [vmem:[%s2101_s11 + $0x10] sm:$0xf]  ;;  %v222_v3 = vlaneseq  ;;  %v2118_v5 = vld [vmem:[%s2101_s11 + $0x4] sm:$0xf] }
  0x23   : > { %v1718_v4 = vcombine.low %v2110_v1, %v2113_v2  ;;  %v202_v6 = vld [vmem:[%s2101_s11 + $0x8] sm:$0xf]  ;;  %v2122_v7 = vld [vmem:[%s2101_s11 + $0x14] sm:$0xf]  ;;  %v2126_v9 = vld [vmem:[%s2101_s11 + $0x18] sm:$0xf] }
  0x24   : > { %v1717_v8 = vcombine.low %v2118_v5, %v202_v6  ;;  %v2128_v10 = vshrl.u32 %v222_v3, 7  ;;  %v1719_v13 = vcombine.low %v2122_v7, %v2126_v9  ;;  %vm822_vm0 = vsmask.f32 3328  ;;  %v2141_v30 = vld [vmem:[%s2101_s11 + $0x20] sm:$0xf]  ;;  %s1995_s21 = smov 16  }
  0x25   : > { %v832_v11 = vshrl.u32 %v1718_v4, 16  ;;  %v835_v12 = vshll.u32 %v1718_v4, 16  ;;  %vm1994_vm1 = vmmov 1   ;;  %v2151_v36 = vld [vmem:[%s2101_s11 + $0x1c] sm:$0xf]  ;;  %s1996_s26 = smov 4  }
  0x26   : > { %v824_v14 = vshrl.u32 %v1717_v8, 16  ;;  %v827_v15 = vshll.u32 %v1717_v8, 16  ;;  %v224_v16 = vadd.s32 16, %v2128_v10  ;;  %vm2133_vm2 = vmpackc.low %vm1994_vm1, %vm1994_vm1  ;;  %v841_v20 = vshrl.u32 %v1719_v13, 16  ;;  %s1997_s27 = smov 8   ;;  %s1998_s30 = smov 12  }
  0x27   : > { %v834_v18 = vrot.slane %v832_v11, 4  ;;  %v837_v19 = vrot.slane %v835_v12, 5  ;;  %v844_v21 = vshll.u32 %v1719_v13, 16  ;;  %v276_v25 = vand.u32 15, %v2128_v10  ;;  %s1999_s4 = smov 20   ;;  %s2000_s5 = smov 24  }
  0x28   : > { %v826_v22 = vrot.slane %v824_v14, 4  ;;  %v829_v23 = vrot.slane %v827_v15, 5  ;;  %v1688_v24 = vadd.s32 4294967288, %v224_v16  ;;  %v843_v27 = vrot.slane %v841_v20, 4  ;;  %s2001_s10 = smov 28   ;;  %s2002_s6 = smov 32  }
  0x29   : > { %v838_v26 = vor.u32 %v837_v19, %v834_v18  ;;  %v846_v28 = vrot.slane %v844_v21, 5  ;;  %v719_v29 = vsel %vm2133_vm2, %v202_v6, 0  ;;  %vm634_vm3 = vcmp.ne.s32.totalorder %v276_v25, 0  ;;  %p1756_p1 = scmp.ne.s32.totalorder %s1975_s15, 1 }
  0x2a   : > { %v830_v31 = vor.u32 %v829_v23, %v826_v22  ;;  %v283_v32 = vand.u32 15, %v1688_v24  ;;  %v228_v33 = vadd.s32 48, %v2128_v10  ;;  %v616_v35 = vsel %vm2133_vm2, %v2110_v1, 0  ;;  %vm697_vm4 = vmpackc.low %vm634_vm3, %vm634_vm3  ;;  %v2209_v22 = vld [vmem:[%s2101_s11 + $0x28] sm:$0xf] }
  0x2b   : > { %1029 = vrot.lane.b32.xlu1 %v838_v26, %s1995_s21  ;;  %v2145_v34 = vor.u32 %v846_v28, %v843_v27  ;;  %v226_v37 = vadd.s32 32, %v2128_v10  ;;  %v718_v38 = vsel %vm697_vm4, %v2118_v5, 0  ;;  %v1720_v40 = vcombine.low %v2151_v36, %v2141_v30  ;;  %v209_v27 = vld [vmem:[%s2101_s11 + $0x24] sm:$0xf] }
  0x2c   : > { %894 = vrot.lane.b32.xlu0 %v830_v31, %s1996_s26  ;;  %vm531_vm5 = vcmp.ne.s32.totalorder %v283_v32, 15  ;;  %v1692_v39 = vadd.s32 4294967288, %v228_v33  ;;  %v839_v42 = vsel %vm822_vm0, %v830_v31, %v838_v26  ;;  %v1725_v43 = vcombine.low %v718_v38, %v719_v29 }
  0x2d   : > { %v2160_v41 = vsel %vm822_vm0, %v838_v26, %v2145_v34  ;;  %vm594_vm6 = vmpackc.low %vm531_vm5, %vm531_vm5  ;;  %v1690_v44 = vadd.s32 4294967288, %v226_v37  ;;  %v225_v47 = vadd.s32 24, %v2128_v10  ;;  %v227_v48 = vadd.s32 40, %v2128_v10 }
  0x2e   : > { %v615_v45 = vsel %vm594_vm6, %v202_v6, 0  ;;  %v311_v46 = vand.u32 15, %v1692_v39  ;;  %v956_v49 = vrot.slane %v1725_v43, 5  ;;  %v620_v50 = vsel %vm2133_vm2, %v2151_v36, 0 }
  0x2f   : > { %898 = vrot.lane.b32.xlu1 %v2160_v41, %s1996_s26  ;;  %v297_v51 = vand.u32 15, %v1690_v44  ;;  %v2171_v52 = vcombine.low %v615_v45, %v616_v35  ;;  %v1689_v53 = vadd.s32 4294967288, %v225_v47  ;;  %v1691_v54 = vadd.s32 4294967288, %v227_v48  ;;  %v2250_v44 = vld [vmem:[%s2101_s11 + $0x2c] sm:$0xf] }
  0x30   : > { %896 = vrot.lane.b32.xlu0 %v839_v42, %s1996_s26  ;;  %vm535_vm7 = vcmp.ne.s32.totalorder %v311_v46, 15  ;;  %v618_v55 = vsel %vm2133_vm2, %v2122_v7, 0  ;;  %v850_v56 = vshrl.u32 %v1720_v40, 16  ;;  %v853_v57 = vshll.u32 %v1720_v40, 16  ;;  %v2254_v47 = vld [vmem:[%s2101_s11 + $0x30] sm:$0xf] }
  0x31   : > { %vm598_vm8 = vmpackc.low %vm535_vm7, %vm535_vm7  ;;  %vm533_vm9 = vcmp.ne.s32.totalorder %v297_v51, 15  ;;  %v290_v59 = vand.u32 15, %v1689_v53  ;;  %v304_v60 = vand.u32 15, %v1691_v54  ;;  %v229_v61 = vadd.s32 56, %v2128_v10  ;;  %v2361_v51 = vld [vmem:[%s2101_s11 + $0x48] sm:$0xf] }
  0x32   : > { %v619_v58 = vsel %vm598_vm8, %v2126_v9, 0  ;;  %vm596_vm10 = vmpackc.low %vm533_vm9, %vm533_vm9  ;;  %v721_v0 = vsel %vm2133_vm2, %v2113_v2, 0  ;;  %v723_v6 = vsel %vm2133_vm2, %v2126_v9, 0  ;;  %v230_v8 = vadd.s32 64, %v2128_v10 }
  0x33   : > { %973 = vrot.lane.b32.xlu1 %v956_v49, %s1997_s27  ;;  %v2179_v62 = vcombine.low %v619_v58, %v620_v50  ;;  %v617_v63 = vsel %vm596_vm10, %v2113_v2, 0  ;;  %vm636_vm11 = vcmp.ne.s32.totalorder %v290_v59, 0  ;;  %vm638_vm12 = vcmp.ne.s32.totalorder %v304_v60, 0  ;;  %v2274_v59 = vld [vmem:[%s2101_s11 + $0x38] sm:$0xf] }
  0x34   : > { %997 = vrot.lane.b32.xlu0 %v2171_v52, %s1998_s30  ;;  %v2187_v3 = vcombine.low %v617_v63, %v618_v55  ;;  %v1693_v4 = vadd.s32 4294967288, %v229_v61  ;;  %vm699_vm13 = vmpackc.low %vm636_vm11, %vm636_vm11  ;;  %v852_v2 = vrot.slane %v850_v56, 4  ;;  %v855_v12 = vrot.slane %v853_v57, 5 }
  0x35   : > { %vm701_vm14 = vmpackc.low %vm638_vm12, %vm638_vm12  ;;  %v720_v11 = vsel %vm699_vm13, %v2110_v1, 0  ;;  %vm955_vm15 = vcmask 1042432   ;;  %v1694_v9 = vadd.s32 4294967288, %v230_v8  ;;  %v231_v23 = vadd.s32 72, %v2128_v10  ;;  %v2293_v8 = vld [vmem:[%s2101_s11 + $0x34] sm:$0xf] }
  0x36   : > { %v318_v13 = vand.u32 15, %v1693_v4  ;;  %v722_v14 = vsel %vm701_vm14, %v2122_v7, 0  ;;  %v1726_v15 = vcombine.low %v720_v11, %v721_v0  ;;  %v2201_v19 = vor.u32 %v855_v12, %v852_v2  ;;  %v1894_v0 = vld [vmem:[%s2731_s1] sm:$0xff]   ;;  %v2296_v11 = vld [vmem:[%s2101_s11 + $0x3c] sm:$0xf] }
  0x37   : > { %999 = vrot.lane.b32.xlu1 %v2187_v3, %s1998_s30  ;;  %v1727_v16 = vcombine.low %v722_v14, %v723_v6  ;;  %v725_v7 = vsel %vm2133_vm2, %v2141_v30, 0  ;;  %v325_v25 = vand.u32 15, %v1694_v9  ;;  %v1721_v29 = vcombine.low %v209_v27, %v2209_v22  ;;  %1771 = vmatprep.subr.bf16.mxu0 %v1894_v0 }
  0x38   : > { %1001 = vrot.lane.b32.xlu0 %v2179_v62, %s1998_s30  ;;  %vm640_vm1 = vcmp.ne.s32.totalorder %v318_v13, 0  ;;  %v957_v18 = vrot.slane %v1726_v15, 5  ;;  %v2222_v28 = vsel %vm822_vm0, %v2145_v34, %v2201_v19  ;;  %v233_v31 = vadd.s32 88, %v2128_v10  ;;  %1772 = vmatpush3.bf16.msra.mxu0 %v1894_v0 }
  0x39   : > { %vm703_vm3 = vmpackc.low %vm640_vm1, %vm640_vm1  ;;  %v2199_v1 = vrot.slane %v1727_v16, 5  ;;  %v1695_v32 = vadd.s32 4294967288, %v231_v23  ;;  %vm2228_vm4 = vcmp.ne.s32.totalorder %v325_v25, 15  ;;  %v859_v37 = vshrl.u32 %v1721_v29, 16  ;;  %v1895_v25 = vld [vmem:[%s2731_s1 + $0x8] sm:$0xff]   ;;  %1793 = vmatprep.subr.bf16.mxu1 %v1894_v0 }
  0x3a   : > { %v724_v20 = vsel %vm703_vm3, %v2151_v36, 0  ;;  %v958_v21 = vsel %vm955_vm15, %v956_v49, %v957_v18  ;;  %v1697_v35 = vadd.s32 4294967288, %v233_v31  ;;  %vm600_vm5 = vmpackc.low %vm2228_vm4, %vm2228_vm4  ;;  %v862_v39 = vshll.u32 %v1721_v29, 16  ;;  %1796 = vmatpush3.bf16.msra.mxu1 %v1894_v0  ;;  %1773 = vmatprep.subr.bf16.mxu0 %v1895_v25 }
  0x3b   : > { %v960_v24 = vsel %vm955_vm15, %v957_v18, %v2199_v1  ;;  %v2216_v26 = vcombine.low %v724_v20, %v725_v7  ;;  %v332_v40 = vand.u32 15, %v1695_v32  ;;  %v622_v43 = vsel %vm2133_vm2, %v209_v27, 0  ;;  %1794 = vmatprep.subr.bf16.mxu1 %v1895_v25 }
  0x3c   : > { %975 = vrot.lane.b32.xlu0 %v958_v21, %s1997_s27  ;;  %977 = vrot.lane.b32.xlu1 %v960_v24, %s1997_s27  ;;  %v346_v38 = vand.u32 15, %v1697_v35  ;;  %v621_v45 = vsel %vm600_vm5, %v2141_v30, 0  ;;  %v861_v46 = vrot.slane %v859_v37, 4  ;;  %v236_v49 = vadd.s32 112, %v2128_v10 }
  0x3d   : > { %v961_v36 = vrot.slane %v2216_v26, 5  ;;  %v864_v50 = vrot.slane %v862_v39, 5  ;;  %vm2257_vm8 = vcmp.ne.s32.totalorder %v332_v40, 0  ;;  %v729_v54 = vsel %vm2133_vm2, %v2254_v47, 0  ;;  %v2344_v39 = vld [vmem:[%s2101_s11 + $0x44] sm:$0xf]  ;;  %1774 = vmatpush3.bf16.msra.mxu0 %v1895_v25 }
  0x3e   : > { %vm644_vm6 = vcmp.ne.s32.totalorder %v346_v38, 0  ;;  %v1700_v55 = vadd.s32 4294967288, %v236_v49  ;;  %v237_v56 = vadd.s32 120, %v2128_v10  ;;  %v2270_v57 = vcombine.low %v621_v45, %v622_v43  ;;  %vm705_vm9 = vmpackc.low %vm2257_vm8, %vm2257_vm8  ;;  %1797 = vmatpush3.bf16.msra.mxu1 %v1895_v25 }
  0x3f   : > { %v2245_v42 = vsel %vm955_vm15, %v2199_v1, %v961_v36  ;;  %vm707_vm7 = vmpackc.low %vm644_vm6, %vm644_vm6  ;;  %v232_v58 = vadd.s32 80, %v2128_v10  ;;  %v731_v61 = vsel %vm2133_vm2, %v2274_v59, 0  ;;  %v2287_v4 = vor.u32 %v864_v50, %v861_v46 }
  0x40   : > { %1031 = vrot.lane.b32.xlu0 %v2160_v41, %s1995_s21  ;;  %1033 = vrot.lane.b32.xlu1 %v2222_v28, %s1995_s21  ;;  %v235_v41 = vadd.s32 104, %v2128_v10  ;;  %v728_v53 = vsel %vm707_vm7, %v2250_v44, 0  ;;  %v367_v63 = vand.u32 15, %v1700_v55  ;;  %v727_v6 = vsel %vm2133_vm2, %v2209_v22, 0 }
  0x41   : > { %v2279_v60 = vcombine.low %v728_v53, %v729_v54  ;;  %v1701_v2 = vadd.s32 4294967288, %v237_v56  ;;  %v628_v13 = vsel %vm2133_vm2, %v2296_v11, 0  ;;  %v238_v14 = vadd.s32 128, %v2128_v10 }
  0x42   : > { %v1699_v48 = vadd.s32 4294967288, %v235_v41  ;;  %vm543_vm12 = vcmp.ne.s32.totalorder %v367_v63, 15  ;;  %v726_v15 = vsel %vm705_vm9, %v209_v27, 0  ;;  %v1696_v16 = vadd.s32 4294967288, %v232_v58 }
  0x43   : > { %vm606_vm13 = vmpackc.low %vm543_vm12, %vm543_vm12  ;;  %v374_v20 = vand.u32 15, %v1701_v2  ;;  %v965_v7 = vrot.slane %v2279_v60, 5  ;;  %v1702_v23 = vadd.s32 4294967288, %v238_v14  ;;  %v2328_v32 = vcombine.low %v726_v15, %v727_v6 }
  0x44   : > { %1057 = vrot.lane.b32.xlu0 %v957_v18, %s1999_s4  ;;  %1059 = vrot.lane.b32.xlu1 %v960_v24, %s1999_s4  ;;  %v360_v30 = vand.u32 15, %v1699_v48  ;;  %v2313_v18 = vld [vmem:[%s2101_s11 + $0x40] sm:$0xf]  ;;  %v627_v21 = vsel %vm606_vm13, %v2274_v59, 0  ;;  %v239_v24 = vadd.s32 136, %v2128_v10  ;;  %v2335_v37 = vsel %vm822_vm0, %v2201_v19, %v2287_v4 }
  0x45   : > { %v2321_v29 = vcombine.low %v627_v21, %v628_v13  ;;  %vm648_vm14 = vcmp.ne.s32.totalorder %v374_v20, 0  ;;  %v733_v31 = vsel %vm2133_vm2, %v2313_v18, 0  ;;  %v381_v33 = vand.u32 15, %v1702_v23  ;;  %v2399_v21 = vld [vmem:[%s2101_s11 + $0x4c] sm:$0xf] }
  0x46   : > { %vm646_vm10 = vcmp.ne.s32.totalorder %v360_v30, 0  ;;  %vm711_vm1 = vmpackc.low %vm648_vm14, %vm648_vm14  ;;  %v1703_v35 = vadd.s32 4294967288, %v239_v24  ;;  %v2348_v40 = vcombine.low %v2250_v44, %v2254_v47  ;;  %v630_v19 = vsel %vm2133_vm2, %v2344_v39, 0 }
  0x47   : > { %vm709_vm11 = vmpackc.low %vm646_vm10, %vm646_vm10  ;;  %vm545_vm3 = vcmp.ne.s32.totalorder %v381_v33, 15  ;;  %v339_v43 = vand.u32 15, %v1696_v16  ;;  %v1687_v46 = vadd.s32 4294967288, %v2128_v10  ;;  %v614_v48 = vsel %vm2133_vm2, %v2118_v5, 0 }
  0x48   : > { %1061 = vrot.lane.b32.xlu0 %v2245_v42, %s1999_s4  ;;  %1081 = vrot.lane.b32.xlu1 %v2187_v3, %s2000_s5  ;;  %v730_v12 = vsel %vm709_vm11, %v2293_v8, 0  ;;  %vm608_vm4 = vmpackc.low %vm545_vm3, %vm545_vm3  ;;  %v388_v45 = vand.u32 15, %v1703_v35  ;;  %v963_v49 = vrot.slane %v2328_v32, 5  ;;  %v240_v54 = vadd.s32 144, %v2128_v10 }
  0x49   : > { %v1731_v9 = vcombine.low %v730_v12, %v731_v61  ;;  %v2364_v53 = vsel %vm608_vm4, %v2313_v18, 0  ;;  %v735_v55 = vsel %vm2133_vm2, %v2361_v51, 0  ;;  %v266_v56 = vsub.s32 0, %v1687_v46 }
  0x4a   : > { %v2370_v30 = vcombine.low %v2364_v53, %v630_v19  ;;  %vm650_vm5 = vcmp.ne.s32.totalorder %v388_v45, 0  ;;  %v868_v58 = vshrl.u32 %v2348_v40, 16  ;;  %v1704_v63 = vadd.s32 4294967288, %v240_v54 }
  0x4b   : > { %v967_v27 = vrot.slane %v1731_v9, 5  ;;  %vm713_vm6 = vmpackc.low %vm650_vm5, %vm650_vm5  ;;  %vm2379_vm7 = vcmp.ne.s32.totalorder %v339_v43, 15  ;;  %v269_v6 = vand.u32 15, %v266_v56  ;;  %v241_v2 = vadd.s32 152, %v2128_v10 }
  0x4c   : > { %1083 = vrot.lane.b32.xlu0 %v2179_v62, %s2000_s5  ;;  %1085 = vrot.lane.b32.xlu1 %v2270_v57, %s2000_s5  ;;  %v234_v12 = vadd.s32 96, %v2128_v10  ;;  %v395_v15 = vand.u32 15, %v1704_v63  ;;  %v2395_v16 = vsel %vm955_vm15, %v961_v36, %v963_v49  ;;  %v871_v9 = vshll.u32 %v2348_v40, 16  ;;  %vm602_vm8 = vmpackc.low %vm2379_vm7, %vm2379_vm7 }
  0x4d   : > { %v2340_v38 = vsel %vm955_vm15, %v965_v7, %v967_v27  ;;  %v270_v20 = vsub.s32 0, %v269_v6  ;;  %v1705_v23 = vadd.s32 4294967288, %v241_v2  ;;  %v632_v26 = vsel %vm2133_vm2, %v2399_v21, 0 }
  0x4e   : > { %vm547_vm9 = vcmp.ne.s32.totalorder %v395_v15, 15  ;;  %v623_v43 = vsel %vm602_vm8, %v2209_v22, 0  ;;  %v870_v45 = vrot.slane %v868_v58, 4  ;;  %v873_v46 = vrot.slane %v871_v9, 5 }
  0x4f   : > { %vm419_vm10 = vcmp.ne.s32.totalorder %v270_v20, 0  ;;  %vm441_vm11 = vcmp.lt.s32.totalorder %v270_v20, 0  ;;  %vm610_vm12 = vmpackc.low %vm547_vm9, %vm547_vm9  ;;  %v402_v36 = vand.u32 15, %v1705_v23  ;;  %v243_v54 = vadd.s32 168, %v2128_v10 }
  0x50   : > { %1113 = vrot.lane.b32.xlu0 %v2145_v34, %s2001_s10  ;;  %1115 = vrot.lane.b32.xlu1 %v2222_v28, %s2001_s10  ;;  %v732_v34 = vsel %vm711_vm1, %v2296_v11, 0  ;;  %vm463_vm13 = vmand %vm441_vm11, %vm419_vm10  ;;  %v2416_v35 = vsel %vm610_vm12, %v2361_v51, 0  ;;  %v1723_v22 = vcombine.low %v2293_v8, %v2274_v59  ;;  %v1896_v59 = vld [vmem:[%s2731_s1 + $0x10] ss:$0 sps:$4 sm:$0x33]   ;;  %v874_v2 = vor.u32 %v873_v46, %v870_v45 }
  0x51   : > { %v1732_v41 = vcombine.low %v732_v34, %v733_v31  ;;  %v624_v34 = vsel %vm2133_vm2, %v2250_v44, 0  ;;  %vm652_vm14 = vcmp.ne.s32.totalorder %v402_v36, 0  ;;  %v2425_v19 = vcombine.low %v2416_v35, %v632_v26 }
  0x52   : > { %vm715_vm3 = vmpackc.low %vm652_vm14, %vm652_vm14  ;;  %v2447_v0 = vcombine.low %v623_v43, %v624_v34  ;;  %v1707_v6 = vadd.s32 4294967288, %v243_v54  ;;  %v877_v9 = vshrl.u32 %v1723_v22, 16  ;;  %v880_v26 = vshll.u32 %v1723_v22, 16 }
  0x53   : > { %v969_v50 = vrot.slane %v1732_v41, 5  ;;  %v200_v41 = vld [vmem:[%s2101_s11] sm:$0xf]  ;;  %v736_v44 = vsel %vm715_vm3, %v2399_v21, 0  ;;  %v1724_v60 = vcombine.low %v2296_v11, %v2313_v18  ;;  %v1736_v11 = vcombine.low %v2344_v39, %v2361_v51 }
  0x54   : > { %1117 = vrot.lane.b32.xlu0 %v2335_v37, %s2001_s10  ;;  %1141 = vrot.lane.b32.xlu1 %v2199_v1, %s2002_s6  ;;  %v734_v1 = vsel %vm713_vm6, %v2344_v39, 0  ;;  %v1738_v63 = vcombine.low %v736_v44, %v736_v44  ;;  %vm1444_vm6 = vcmask 1041408   ;;  %v879_v36 = vrot.slane %v877_v9, 4 }
  0x55   : > { %v2377_v61 = vsel %vm955_vm15, %v967_v27, %v969_v50  ;;  %v1737_v13 = vcombine.low %v734_v1, %v735_v55  ;;  %v1733_v14 = vcombine.low %v734_v1, %v734_v1  ;;  %v1698_v27 = vadd.s32 4294967288, %v234_v12  ;;  %1799 = vmatprep.subr.msk.bf16.mxu0 %vm1444_vm6, %v1896_v59  ;;  %1800 = vmatprep.subr.msk.bf16.mxu1 %vm1444_vm6, %v1896_v59 }
  0x56   : > { %v1055_v12 = vrot.slane %v1738_v63, 5  ;;  %v1446_v23 = vsel %vm1444_vm6, %v1896_v59, 0  ;;  %v889_v32 = vshll.u32 %v1724_v60, 16  ;;  %v1021_v45 = vshrl.u32 %v1736_v11, 16 }
  0x57   : > { %v1053_v24 = vrot.slane %v1737_v13, 5  ;;  %v971_v25 = vrot.slane %v1733_v14, 5  ;;  %v353_v56 = vand.u32 15, %v1698_v27  ;;  %v416_v13 = vand.u32 15, %v1707_v6  ;;  %1776 = vmatpush3.bf16.msra.mxu0 %v1446_v23  ;;  %1798 = vmatpush3.bf16.msra.mxu1 %v1446_v23 }
  0x58   : > { %1143 = vrot.lane.b32.xlu0 %v2245_v42, %s2002_s6  ;;  %900 = vrot.lane.b32.xlu1 %v2222_v28, %s1996_s26  ;;  %v485_v28 = vadd.s32 16, %v270_v20  ;;  %v966_v27 = vsel %vm955_vm15, %v963_v49, %v965_v7  ;;  %v886_v7 = vshrl.u32 %v1724_v60, 16  ;;  %v1024_v46 = vshll.u32 %v1736_v11, 16 }
  0x59   : > { %v2410_v31 = vsel %vm955_vm15, %v969_v50, %v1053_v24  ;;  %v2413_v33 = vsel %vm955_vm15, %v969_v50, %v971_v25  ;;  %v2434_v50 = vld [vmem:[%s2101_s11 + $0x50] sm:$0xf]  ;;  %vm2460_vm5 = vcmp.ne.s32.totalorder %v353_v56, 15  ;;  %v2465_v5 = vsel %vm955_vm15, %v1053_v24, %v1055_v12 }
  0x5a   : > { %v507_v40 = vsel %vm463_vm13, %v485_v28, %v270_v20  ;;  %v737_v55 = vsel %vm2133_vm2, %v2434_v50, 0  ;;  %vm654_vm7 = vcmp.ne.s32.totalorder %v416_v13, 0  ;;  %v875_v25 = vsel %vm822_vm0, %v2287_v4, %v874_v2  ;;  %vm604_vm9 = vmpackc.low %vm2460_vm5, %vm2460_vm5 }
  0x5b   : > { %vm529_vm1 = vcmp.ne.s32.totalorder %v507_v40, 15  ;;  %vm717_vm8 = vmpackc.low %vm654_vm7, %vm654_vm7  ;;  %v626_v4 = vsel %vm2133_vm2, %v2293_v8, 0  ;;  %v625_v34 = vsel %vm604_vm9, %v2254_v47, 0  ;;  %v882_v40 = vrot.slane %v880_v26, 5 }
  0x5c   : > { %1145 = vrot.lane.b32.xlu0 %v2395_v16, %s2002_s6  ;;  %902 = vrot.lane.b32.xlu1 %v2335_v37, %s1996_s26  ;;  %vm592_vm4 = vmpackc.low %vm529_vm1, %vm529_vm1  ;;  %v2496_v17 = vcombine.low %v625_v34, %v626_v4  ;;  %v888_v49 = vrot.slane %v886_v7, 4  ;;  %v1026_v54 = vrot.slane %v1024_v46, 5  ;;  %v1741_v6 = vcombine.low %v2399_v21, %v2434_v50 }
  0x5d   : > { %v613_v58 = vsel %vm592_vm4, %v200_v41, 0  ;;  %v883_v8 = vor.u32 %v882_v40, %v879_v36  ;;  %vm1159_vm10 = vcmask 31744   ;;  %vm1187_vm11 = vcmask 64512  }
  0x5e   : > { %v2453_v1 = vcombine.low %v613_v58, %v614_v48  ;;  %v221_v48 = vld [vmem:[%s2101_s11 + $0x54] sm:$0xf]  ;;  %vm1225_vm12 = vcmask 130048   ;;  %vm1244_vm13 = vcmask 162816   ;;  %vm1263_vm14 = vcmask 195584  }
  0x5f   : > { %v738_v28 = vsel %vm717_vm8, %v221_v48, 0  ;;  %v884_v47 = vsel %vm822_vm0, %v874_v2, %v883_v8  ;;  %v1108_v2 = vshll.u32 %v1741_v6, 16  ;;  %vm1282_vm1 = vcmask 228352  }
  0x60   : > { %979 = vrot.lane.b32.xlu0 %v2245_v42, %s1997_s27  ;;  %981 = vrot.lane.b32.xlu1 %v2395_v16, %s1997_s27  ;;  %v1742_v42 = vcombine.low %v736_v44, %v737_v55  ;;  %v1023_v44 = vrot.slane %v1021_v45, 4  ;;  %vm1301_vm3 = vcmask 261120   ;;  %vm1332_vm4 = vsmask.f32 4352 }
  0x61   : > { %v1110_v13 = vrot.slane %v1108_v2, 5  ;;  %vm1419_vm5 = vcmask 293888  }
  0x62   : > { %v1137_v14 = vrot.slane %v1742_v42, 5  ;;  %v1027_v39 = vor.u32 %v1026_v54, %v1023_v44 }
  0x64   : > { %1003 = vrot.lane.b32.xlu0 %v2270_v57, %s1998_s30  ;;  %1005 = vrot.lane.b32.xlu1 %v2447_v0, %s1998_s30  ;;  %v2471_v20 = vsel %vm955_vm15, %v1053_v24, %v1137_v14  ;;  %v1743_v24 = vcombine.low %v738_v28, %v738_v28 }
  0x66   : > { %v1139_v41 = vrot.slane %v1743_v24, 5 }
  0x68   : > { %1035 = vrot.lane.b32.xlu0 %v2335_v37, %s1995_s21  ;;  %1037 = vrot.lane.b32.xlu1 %v875_v25, %s1995_s21  ;;  %v2493_v37 = vsel %vm955_vm15, %v1137_v14, %v1139_v41 }
  0x6c   : > { %1063 = vrot.lane.b32.xlu0 %v2395_v16, %s1999_s4  ;;  %1065 = vrot.lane.b32.xlu1 %v966_v27, %s1999_s4  ;;  %v891_v16 = vrot.slane %v889_v32, 5 }
  0x6e   : > { %v892_v43 = vor.u32 %v891_v16, %v888_v49 }
  0x70   : > { %1087 = vrot.lane.b32.xlu0 %v2447_v0, %s2000_s5  ;;  %1089 = vrot.lane.b32.xlu1 %v2496_v17, %s2000_s5  ;;  %v893_v18 = vsel %vm822_vm0, %v883_v8, %v892_v43  ;;  %v1028_v51 = vsel %vm822_vm0, %v892_v43, %v1027_v39 }
  0x74   : > { %1119 = vrot.lane.b32.xlu0 %v875_v25, %s2001_s10  ;;  %1121 = vrot.lane.b32.xlu1 %v884_v47, %s2001_s10 }
  0x78   : > { %1147 = vrot.lane.b32.xlu0 %v966_v27, %s2002_s6  ;;  %904 = vrot.lane.b32.xlu1 %v875_v25, %s1996_s26 }
  0x7c   : > { %1149 = vrot.lane.b32.xlu0 %v2340_v38, %s2002_s6  ;;  %906 = vrot.lane.b32.xlu1 %v884_v47, %s1996_s26 }
  0x80   : > { %983 = vrot.lane.b32.xlu0 %v966_v27, %s1997_s27  ;;  %985 = vrot.lane.b32.xlu1 %v2340_v38, %s1997_s27 }
  0x84   : > { %1007 = vrot.lane.b32.xlu0 %v2496_v17, %s1998_s30  ;;  %1009 = vrot.lane.b32.xlu1 %v2321_v29, %s1998_s30 }
  0x88   : > { %1039 = vrot.lane.b32.xlu0 %v884_v47, %s1995_s21  ;;  %1041 = vrot.lane.b32.xlu1 %v893_v18, %s1995_s21 }
  0x8c   : > { %1067 = vrot.lane.b32.xlu0 %v2340_v38, %s1999_s4  ;;  %1069 = vrot.lane.b32.xlu1 %v2377_v61, %s1999_s4  ;;  %v242_v38 = vadd.s32 160, %v2128_v10  ;;  %v1735_v10 = vcombine.low %v2416_v35, %v2416_v35 }
  0x8e   : > { %v1706_v55 = vadd.s32 4294967288, %v242_v38 }
  0x90   : > { %1091 = vrot.lane.b32.xlu0 %v2321_v29, %s2000_s5  ;;  %1093 = vrot.lane.b32.xlu1 %v2370_v30, %s2000_s5  ;;  %v409_v58 = vand.u32 15, %v1706_v55 }
  0x92   : > { %vm549_vm2 = vcmp.ne.s32.totalorder %v409_v58, 15 }
  0x93   : > { %vm612_vm15 = vmpackc.low %vm549_vm2, %vm549_vm2 }
  0x94   : > { %1123 = vrot.lane.b32.xlu0 %v893_v18, %s2001_s10  ;;  %1125 = vrot.lane.b32.xlu1 %v1028_v51, %s2001_s10  ;;  %v633_v14 = vsel %vm612_vm15, %v2434_v50, 0 }
  0x98   : > { %1151 = vrot.lane.b32.xlu0 %v2377_v61, %s2002_s6  ;;  %908 = vrot.lane.b32.xlu1 %v893_v18, %s1996_s26 }
  0x9c   : > { %1153 = vrot.lane.b32.xlu0 %v2410_v31, %s2002_s6  ;;  %910 = vrot.lane.b32.xlu1 %v892_v43, %s1996_s26 }
  0x9d   : > { %v1030_v56 = vpop.permute.xlu1 %1029 }
  0x9e   : > { %v895_v22 = vpop.permute.xlu0 %894 }
  0x9f   : > { %v1162_v28 = vsel %vm1159_vm10, %v2453_v1, %v895_v22 }
  0xa0   : > { %987 = vrot.lane.b32.xlu0 %v2377_v61, %s1997_s27  ;;  %989 = vrot.lane.b32.xlu1 %v2413_v33, %s1997_s27  ;;  %v1105_v61 = vshrl.u32 %v1741_v6, 16 }
  0xa1   : > { %v899_v63 = vpop.permute.xlu1 %898 }
  0xa2   : > { %v897_v42 = vpop.permute.xlu0 %896  ;;  %v1107_v35 = vrot.slane %v1105_v61, 4  ;;  %v1168_v1 = vsel %vm1159_vm10, %v2187_v3, %v899_v63 }
  0xa4   : > { %1011 = vrot.lane.b32.xlu0 %v2370_v30, %s1998_s30  ;;  %1013 = vrot.lane.b32.xlu1 %v1735_v10, %s1998_s30  ;;  %v1740_v30 = vcombine.low %v633_v14, %v633_v14  ;;  %v1111_v15 = vor.u32 %v1110_v13, %v1107_v35 }
  0xa5   : > { %v974_v59 = vpop.permute.xlu1 %973 }
  0xa6   : > { %v998_v12 = vpop.permute.xlu0 %997  ;;  %v1112_v23 = vsel %vm822_vm0, %v1027_v39, %v1111_v15  ;;  %vm1206_vm0 = vcmask 97280   ;;  %v1189_v24 = vsel %vm1187_vm11, %v1162_v28, %v974_v59 }
  0xa7   : > { %v1208_v27 = vsel %vm1206_vm0, %v1189_v24, %v998_v12 }
  0xa8   : > { %1043 = vrot.lane.b32.xlu0 %v1028_v51, %s1995_s21  ;;  %1045 = vrot.lane.b32.xlu1 %v1027_v39, %s1995_s21 }
  0xa9   : > { %v1000_v33 = vpop.permute.xlu1 %999 }
  0xaa   : > { %v1002_v21 = vpop.permute.xlu0 %1001 }
  0xac   : > { %1071 = vrot.lane.b32.xlu0 %v2410_v31, %s1999_s4  ;;  %1073 = vrot.lane.b32.xlu1 %v2465_v5, %s1999_s4 }
  0xae   : > { %v976_v48 = vpop.permute.xlu0 %975  ;;  %v978_v9 = vpop.permute.xlu1 %977 }
  0xaf   : > { %v1193_v47 = vsel %vm1187_vm11, %v1168_v1, %v978_v9 }
  0xb0   : > { %1095 = vrot.lane.b32.xlu0 %v2425_v19, %s2000_s5  ;;  %1097 = vrot.lane.b32.xlu1 %v1740_v30, %s2000_s5  ;;  %v1212_v3 = vsel %vm1206_vm0, %v1193_v47, %v1002_v21 }
  0xb2   : > { %v1032_v25 = vpop.permute.xlu0 %1031  ;;  %v1034_v26 = vpop.permute.xlu1 %1033 }
  0xb3   : > { %v1231_v44 = vsel %vm1225_vm12, %v1212_v3, %v1034_v26 }
  0xb4   : > { %1127 = vrot.lane.b32.xlu0 %v1112_v23, %s2001_s10  ;;  %1129 = vrot.lane.b32.xlu1 %v1111_v15, %s2001_s10 }
  0xb6   : > { %v1058_v31 = vpop.permute.xlu0 %1057  ;;  %v1060_v50 = vpop.permute.xlu1 %1059 }
  0xb8   : > { %1155 = vrot.lane.b32.xlu0 %v2471_v20, %s2002_s6  ;;  %1157 = vrot.lane.b32.xlu1 %v2493_v37, %s2002_s6  ;;  %v1165_v20 = vsel %vm1159_vm10, %v2171_v52, %v897_v42  ;;  %v1227_v37 = vsel %vm1225_vm12, %v1208_v27, %v1030_v56 }
  0xb9   : > { %v1191_v40 = vsel %vm1187_vm11, %v1165_v20, %v976_v48  ;;  %v1246_v8 = vsel %vm1244_vm13, %v1227_v37, %v1058_v31 }
  0xba   : > { %v1062_v19 = vpop.permute.xlu0 %1061  ;;  %v1082_v5 = vpop.permute.xlu1 %1081  ;;  %v1210_v60 = vsel %vm1206_vm0, %v1191_v40, %v1000_v33 }
  0xbb   : > { %v1265_v52 = vsel %vm1263_vm14, %v1246_v8, %v1082_v5  ;;  %v1229_v32 = vsel %vm1225_vm12, %v1210_v60, %v1032_v25  ;;  %v1250_v51 = vsel %vm1244_vm13, %v1231_v44, %v1062_v19 }
  0xbc   : > { %v1248_v43 = vsel %vm1244_vm13, %v1229_v32, %v1060_v50 }
  0xbe   : > { %v1084_v4 = vpop.permute.xlu0 %1083  ;;  %v1086_v36 = vpop.permute.xlu1 %1085 }
  0xbf   : > { %v1267_v18 = vsel %vm1263_vm14, %v1248_v43, %v1084_v4  ;;  %v1269_v10 = vsel %vm1263_vm14, %v1250_v51, %v1086_v36 }
  0xc2   : > { %v1114_v34 = vpop.permute.xlu0 %1113  ;;  %v1116_v41 = vpop.permute.xlu1 %1115 }
  0xc3   : > { %v1284_v49 = vsel %vm1282_vm1, %v1265_v52, %v1114_v34  ;;  %v1286_v54 = vsel %vm1282_vm1, %v1267_v18, %v1116_v41 }
  0xc6   : > { %v1118_v7 = vpop.permute.xlu0 %1117  ;;  %v1142_v16 = vpop.permute.xlu1 %1141 }
  0xc7   : > { %v1303_v11 = vsel %vm1301_vm3, %v1284_v49, %v1142_v16  ;;  %v1288_v6 = vsel %vm1282_vm1, %v1269_v10, %v1118_v7 }
  0xc8   : > { %v1333_v45 = vshrl.u32 %v1303_v11, 16  ;;  %v1336_v46 = vshll.u32 %v1303_v11, 16 }
  0xca   : > { %v1144_v39 = vpop.permute.xlu0 %1143  ;;  %v901_v38 = vpop.permute.xlu1 %900  ;;  %v1335_v56 = vrot.slane %v1333_v45, 3  ;;  %v1338_v22 = vrot.slane %v1336_v46, 4 }
  0xcb   : > { %v1305_v55 = vsel %vm1301_vm3, %v1286_v54, %v1144_v39  ;;  %v1171_v36 = vsel %vm1159_vm10, %v2179_v62, %v901_v38 }
  0xcc   : > { %v1340_v58 = vshrl.u32 %v1305_v55, 16  ;;  %v1343_v63 = vshll.u32 %v1305_v55, 16  ;;  %v1339_v13 = vor.u32 %v1338_v22, %v1335_v56 }
  0xce   : > { %v1342_v42 = vrot.slane %v1340_v58, 3  ;;  %v1345_v59 = vrot.slane %v1343_v63, 4  ;;  %v1146_v61 = vpop.permute.xlu0 %1145  ;;  %v903_v2 = vpop.permute.xlu1 %902 }
  0xcf   : > { %v1307_v12 = vsel %vm1301_vm3, %v1288_v6, %v1146_v61  ;;  %v1174_v37 = vsel %vm1159_vm10, %v2270_v57, %v903_v2 }
  0xd0   : > { %v1348_v33 = vshrl.u32 %v1307_v12, 16  ;;  %v1351_v35 = vshll.u32 %v1307_v12, 16  ;;  %v1346_v21 = vor.u32 %v1345_v59, %v1342_v42 }
  0xd2   : > { %v1350_v14 = vrot.slane %v1348_v33, 3  ;;  %v1353_v30 = vrot.slane %v1351_v35, 4  ;;  %v980_v15 = vpop.permute.xlu0 %979  ;;  %v1347_v48 = vsel %vm1332_vm4, %v1339_v13, %v1346_v21  ;;  %v982_v9 = vpop.permute.xlu1 %981 }
  0xd3   : > { %1777 = vmatprep.mubr.msk.bf16.mxu0 %vm1419_vm5, %v1347_v48  ;;  %v1195_v27 = vsel %vm1187_vm11, %v1171_v36, %v980_v15  ;;  %v1197_v8 = vsel %vm1187_vm11, %v1174_v37, %v982_v9 }
  0xd4   : > { %v1354_v23 = vor.u32 %v1353_v30, %v1350_v14 }
  0xd6   : > { %v1004_v25 = vpop.permute.xlu0 %1003  ;;  %v1355_v26 = vsel %vm1332_vm4, %v1346_v21, %v1354_v23  ;;  %v1006_v31 = vpop.permute.xlu1 %1005 }
  0xd7   : > { %1778 = vmatmul.mubr.msk.bf16.vlgmr.msra.gmra.mrb[0].mxu0 %vm1419_vm5, %v1355_v26  ;;  %v1214_v20 = vsel %vm1206_vm0, %v1195_v27, %v1004_v25  ;;  %v1216_v60 = vsel %vm1206_vm0, %v1197_v8, %v1006_v31 }
  0xda   : > { %v1036_v50 = vpop.permute.xlu0 %1035  ;;  %v1038_v19 = vpop.permute.xlu1 %1037 }
  0xdb   : > { %v1233_v40 = vsel %vm1225_vm12, %v1214_v20, %v1036_v50  ;;  %v1235_v7 = vsel %vm1225_vm12, %v1216_v60, %v1038_v19 }
  0xde   : > { %v1064_v5 = vpop.permute.xlu0 %1063  ;;  %v1066_v28 = vpop.permute.xlu1 %1065 }
  0xdf   : > { %v1252_v1 = vsel %vm1244_vm13, %v1233_v40, %v1064_v5  ;;  %v1254_v16 = vsel %vm1244_vm13, %v1235_v7, %v1066_v28 }
  0xe2   : > { %v1088_v24 = vpop.permute.xlu0 %1087  ;;  %v1090_v4 = vpop.permute.xlu1 %1089 }
  0xe3   : > { %v1271_v47 = vsel %vm1263_vm14, %v1252_v1, %v1088_v24  ;;  %v1273_v11 = vsel %vm1263_vm14, %v1254_v16, %v1090_v4 }
  0xe6   : > { %v1120_v34 = vpop.permute.xlu0 %1119  ;;  %v1122_v41 = vpop.permute.xlu1 %1121 }
  0xe7   : > { %v1290_v62 = vsel %vm1282_vm1, %v1271_v47, %v1120_v34  ;;  %v1292_v3 = vsel %vm1282_vm1, %v1273_v11, %v1122_v41 }
  0xea   : > { %v1148_v52 = vpop.permute.xlu0 %1147  ;;  %v905_v32 = vpop.permute.xlu1 %904 }
  0xeb   : > { %v1309_v49 = vsel %vm1301_vm3, %v1290_v62, %v1148_v52  ;;  %v1177_v21 = vsel %vm1159_vm10, %v2447_v0, %v905_v32 }
  0xec   : > { %v1356_v43 = vshrl.u32 %v1309_v49, 16  ;;  %v1359_v57 = vshll.u32 %v1309_v49, 16 }
  0xee   : > { %v1358_v18 = vrot.slane %v1356_v43, 3  ;;  %v1361_v45 = vrot.slane %v1359_v57, 4  ;;  %v1150_v46 = vpop.permute.xlu0 %1149  ;;  %v907_v44 = vpop.permute.xlu1 %906 }
  0xef   : > { %v1311_v54 = vsel %vm1301_vm3, %v1292_v3, %v1150_v46 }
  0xf0   : > { %v1362_v39 = vor.u32 %v1361_v45, %v1358_v18  ;;  %v1364_v51 = vshrl.u32 %v1311_v54, 16  ;;  %v1367_v38 = vshll.u32 %v1311_v54, 16 }
  0xf2   : > { %v1366_v55 = vrot.slane %v1364_v51, 3  ;;  %v1369_v56 = vrot.slane %v1367_v38, 4  ;;  %v984_v22 = vpop.permute.xlu0 %983  ;;  %v1363_v58 = vsel %vm1332_vm4, %v1354_v23, %v1362_v39  ;;  %v986_v63 = vpop.permute.xlu1 %985  ;;  %v1180_v23 = vsel %vm1159_vm10, %v2496_v17, %v907_v44 }
  0xf3   : > { %1781 = vmatprep.mubr.msk.bf16.mxu0 %vm1419_vm5, %v1363_v58  ;;  %v1199_v14 = vsel %vm1187_vm11, %v1177_v21, %v984_v22  ;;  %v1201_v26 = vsel %vm1187_vm11, %v1180_v23, %v986_v63  ;;  %v1716_v44 = vcombine.low %v2364_v53, %v2364_v53 }
  0xf4   : > { %v1370_v10 = vor.u32 %v1369_v56, %v1366_v55 }
  0xf6   : > { %v1008_v6 = vpop.permute.xlu0 %1007  ;;  %v1371_v42 = vsel %vm1332_vm4, %v1362_v39, %v1370_v10  ;;  %v1010_v59 = vpop.permute.xlu1 %1009 }
  0xf7   : > { %1782 = vmatmul.mubr.msk.bf16.gmra.mrb[4].mxu0 %vm1419_vm5, %v1371_v42  ;;  %v1218_v30 = vsel %vm1206_vm0, %v1199_v14, %v1008_v6  ;;  %v1220_v50 = vsel %vm1206_vm0, %v1201_v26, %v1010_v59 }
  0xfa   : > { %v1040_v61 = vpop.permute.xlu0 %1039  ;;  %v1042_v2 = vpop.permute.xlu1 %1041 }
  0xfb   : > { %v1237_v48 = vsel %vm1225_vm12, %v1218_v30, %v1040_v61  ;;  %v1239_v5 = vsel %vm1225_vm12, %v1220_v50, %v1042_v2 }
  0xfe   : > { %v1068_v12 = vpop.permute.xlu0 %1067  ;;  %v1070_v33 = vpop.permute.xlu1 %1069 }
  0xff   : > { %v1256_v25 = vsel %vm1244_vm13, %v1237_v48, %v1068_v12  ;;  %v1258_v4 = vsel %vm1244_vm13, %v1239_v5, %v1070_v33  ;;  %v1744_v5 = vld [vmem:[%s2732_s2] ss:$0 sm:$0xff] }
 0x102   : > { %v1092_v35 = vpop.permute.xlu0 %1091  ;;  %v1094_v13 = vpop.permute.xlu1 %1093 }
 0x103   : > { %v1275_v31 = vsel %vm1263_vm14, %v1256_v25, %v1092_v35  ;;  %v1277_v27 = vsel %vm1263_vm14, %v1258_v4, %v1094_v13 }
 0x106   : > { %v1124_v15 = vpop.permute.xlu0 %1123  ;;  %v1126_v9 = vpop.permute.xlu1 %1125 }
 0x107   : > { %v1294_v0 = vsel %vm1282_vm1, %v1275_v31, %v1124_v15  ;;  %v1296_v20 = vsel %vm1282_vm1, %v1277_v27, %v1126_v9 }
 0x10a   : > { %v1152_v19 = vpop.permute.xlu0 %1151  ;;  %v909_v28 = vpop.permute.xlu1 %908 }
 0x10b   : > { %v1313_v24 = vsel %vm1301_vm3, %v1294_v0, %v1152_v19  ;;  %v1183_v51 = vsel %vm1159_vm10, %v2321_v29, %v909_v28 }
 0x10c   : > { %v1372_v36 = vshrl.u32 %v1313_v24, 16  ;;  %v1375_v17 = vshll.u32 %v1313_v24, 16 }
 0x10e   : > { %v1374_v34 = vrot.slane %v1372_v36, 3  ;;  %v1377_v40 = vrot.slane %v1375_v17, 4  ;;  %v1154_v41 = vpop.permute.xlu0 %1153  ;;  %v911_v37 = vpop.permute.xlu1 %910 }
 0x10f   : > { %v1315_v1 = vsel %vm1301_vm3, %v1296_v20, %v1154_v41  ;;  %v1186_v38 = vsel %vm1159_vm10, %v1716_v44, %v911_v37 }
 0x110   : > { %v1380_v8 = vshrl.u32 %v1315_v1, 16  ;;  %v1383_v47 = vshll.u32 %v1315_v1, 16  ;;  %v1378_v60 = vor.u32 %v1377_v40, %v1374_v34 }
 0x112   : > { %v1382_v62 = vrot.slane %v1380_v8, 3  ;;  %v1385_v52 = vrot.slane %v1383_v47, 4  ;;  %v988_v7 = vpop.permute.xlu0 %987  ;;  %v1379_v32 = vsel %vm1332_vm4, %v1370_v10, %v1378_v60  ;;  %v990_v49 = vpop.permute.xlu1 %989 }
 0x113   : > { %1785 = vmatprep.mubr.msk.bf16.mxu1 %vm1419_vm5, %v1379_v32  ;;  %v1203_v55 = vsel %vm1187_vm11, %v1183_v51, %v988_v7  ;;  %v1205_v56 = vsel %vm1187_vm11, %v1186_v38, %v990_v49 }
 0x114   : > { %v1386_v16 = vor.u32 %v1385_v52, %v1382_v62 }
 0x116   : > { %v1012_v43 = vpop.permute.xlu0 %1011  ;;  %v1387_v57 = vsel %vm1332_vm4, %v1378_v60, %v1386_v16  ;;  %v1014_v11 = vpop.permute.xlu1 %1013 }
 0x117   : > { %1786 = vmatmul.mubr.msk.bf16.vlgmr.msra.gmra.mrb[0].mxu1 %vm1419_vm5, %v1387_v57  ;;  %v1222_v22 = vsel %vm1206_vm0, %v1203_v55, %v1012_v43  ;;  %v1224_v63 = vsel %vm1206_vm0, %v1205_v56, %v1014_v11 }
 0x11a   : > { %v1044_v3 = vpop.permute.xlu0 %1043  ;;  %v1046_v18 = vpop.permute.xlu1 %1045 }
 0x11b   : > { %v1241_v10 = vsel %vm1225_vm12, %v1222_v22, %v1044_v3  ;;  %v1243_v53 = vsel %vm1225_vm12, %v1224_v63, %v1046_v18 }
 0x11e   : > { %v1072_v45 = vpop.permute.xlu0 %1071  ;;  %v1074_v46 = vpop.permute.xlu1 %1073 }
 0x11f   : > { %v1260_v42 = vsel %vm1244_vm13, %v1241_v10, %v1072_v45  ;;  %v1262_v29 = vsel %vm1244_vm13, %v1243_v53, %v1074_v46 }
 0x122   : > { %v1096_v54 = vpop.permute.xlu0 %1095  ;;  %v1098_v39 = vpop.permute.xlu1 %1097 }
 0x123   : > { %v1279_v59 = vsel %vm1263_vm14, %v1260_v42, %v1096_v54  ;;  %v1281_v61 = vsel %vm1263_vm14, %v1262_v29, %v1098_v39 }
 0x126   : > { %v1128_v58 = vpop.permute.xlu0 %1127  ;;  %v1130_v6 = vpop.permute.xlu1 %1129 }
 0x127   : > { %v1298_v2 = vsel %vm1282_vm1, %v1279_v59, %v1128_v58  ;;  %v1300_v33 = vsel %vm1282_vm1, %v1281_v61, %v1130_v6 }
 0x12a   : > { %v1156_v12 = vpop.permute.xlu0 %1155  ;;  %v1158_v35 = vpop.permute.xlu1 %1157 }
 0x12b   : > { %v1317_v13 = vsel %vm1301_vm3, %v1298_v2, %v1156_v12  ;;  %v1319_v21 = vsel %vm1301_vm3, %v1300_v33, %v1158_v35 }
 0x12c   : > { %v1388_v14 = vshrl.u32 %v1317_v13, 16  ;;  %v1391_v30 = vshll.u32 %v1317_v13, 16  ;;  %v1396_v15 = vshrl.u32 %v1319_v21, 16  ;;  %v1399_v48 = vshll.u32 %v1319_v21, 16 }
 0x12e   : > { %v1390_v9 = vrot.slane %v1388_v14, 3  ;;  %v1393_v23 = vrot.slane %v1391_v30, 4  ;;  %v1398_v25 = vrot.slane %v1396_v15, 3  ;;  %v1401_v26 = vrot.slane %v1399_v48, 4 }
 0x130   : > { %v1394_v31 = vor.u32 %v1393_v23, %v1390_v9  ;;  %v1402_v50 = vor.u32 %v1401_v26, %v1398_v25 }
 0x132   : > { %v1395_v0 = vsel %vm1332_vm4, %v1386_v16, %v1394_v31  ;;  %v1403_v19 = vsel %vm1332_vm4, %v1394_v31, %v1402_v50 }
 0x133   : > { %1789 = vmatprep.mubr.msk.bf16.mxu1 %vm1419_vm5, %v1395_v0 }
 0x134   : > { %1790 = vmatmul.mubr.msk.bf16.gmra.mrb[4].mxu1 %vm1419_vm5, %v1403_v19 }
 0x1aa   : > { %v1779_v28 = vpop.f32.mrb[0].mxu0 }
 0x1ab   : > { %v1482_v24 = vpop.f32.mrb[1].mxu0  ;;  %v1491_v27 = vadd.f32 %v1779_v28, %v1744_v5 }
 0x1ac   : > { %v1483_v4 = vadd.f32 %v1744_v5, %v1482_v24  ;;  %v1780_v36 = vpop.f32.mrb[2].mxu0 }
 0x1ad   : > { %v1485_v17 = vpop.f32.mrb[3].mxu0  ;;  %v1494_v40 = vadd.f32 %v1780_v36, %v1744_v5  ;;  %v1547_v37 = vmax.f32 %v1491_v27, 0.0  ;;  %v1561_v27 = vld [vmem:[%s2105_s20] sm:$0x1] }
 0x1ae   : > { %v1486_v20 = vadd.f32 %v1744_v5, %v1485_v17  ;;  %v1545_v34 = vmax.f32 %v1483_v4, 0.0 }
 0x1af   : > { %v1548_v8 = vmax.f32 %v1494_v40, 0.0 }
 0x1b0   : > { %v1546_v41 = vmax.f32 %v1486_v20, 0.0 }
 0x1b2   : > { %v1562_v1 = vadd.f32 %v1546_v41, %v1545_v34 }
 0x1b4   : > { %v1563_v47 = vadd.f32 %v1562_v1, %v1547_v37 }
 0x1b6   : > { %v1564_v60 = vadd.f32 %v1563_v47, %v1548_v8 }
 0x1ca   : > { %v1783_v62 = vpop.f32.mrb[4].mxu0 }
 0x1cb   : > { %v1498_v52 = vpop.f32.mrb[5].mxu0  ;;  %v1507_v16 = vadd.f32 %v1783_v62, %v1744_v5 }
 0x1cc   : > { %v1499_v7 = vadd.f32 %v1744_v5, %v1498_v52  ;;  %v1784_v32 = vpop.f32.mrb[6].mxu0 }
 0x1cd   : > { %v1501_v49 = vpop.f32.mrb[7].mxu0  ;;  %v1510_v3 = vadd.f32 %v1784_v32, %v1744_v5  ;;  %v1551_v45 = vmax.f32 %v1507_v16, 0.0 }
 0x1ce   : > { %v1549_v43 = vmax.f32 %v1499_v7, 0.0  ;;  %v1502_v57 = vadd.f32 %v1744_v5, %v1501_v49 }
 0x1cf   : > { %v1552_v44 = vmax.f32 %v1510_v3, 0.0 }
 0x1d0   : > { %v1565_v11 = vadd.f32 %v1564_v60, %v1549_v43  ;;  %v1550_v18 = vmax.f32 %v1502_v57, 0.0 }
 0x1d2   : > { %v1566_v46 = vadd.f32 %v1565_v11, %v1550_v18 }
 0x1d4   : > { %v1567_v54 = vadd.f32 %v1566_v46, %v1551_v45 }
 0x1d6   : > { %v1568_v39 = vadd.f32 %v1567_v54, %v1552_v44 }
 0x1ea   : > { %v1787_v51 = vpop.f32.mrb[0].mxu1 }
 0x1eb   : > { %v1514_v38 = vpop.f32.mrb[1].mxu1  ;;  %v1523_v58 = vadd.f32 %v1787_v51, %v1744_v5 }
 0x1ec   : > { %v1515_v55 = vadd.f32 %v1744_v5, %v1514_v38  ;;  %v1788_v56 = vpop.f32.mrb[2].mxu1 }
 0x1ed   : > { %v1517_v22 = vpop.f32.mrb[3].mxu1  ;;  %v1526_v53 = vadd.f32 %v1788_v56, %v1744_v5  ;;  %v1555_v29 = vmax.f32 %v1523_v58, 0.0 }
 0x1ee   : > { %v1553_v63 = vmax.f32 %v1515_v55, 0.0  ;;  %v1518_v10 = vadd.f32 %v1744_v5, %v1517_v22 }
 0x1ef   : > { %v1556_v61 = vmax.f32 %v1526_v53, 0.0 }
 0x1f0   : > { %v1569_v6 = vadd.f32 %v1568_v39, %v1553_v63  ;;  %v1554_v42 = vmax.f32 %v1518_v10, 0.0 }
 0x1f2   : > { %v1570_v59 = vadd.f32 %v1569_v6, %v1554_v42 }
 0x1f4   : > { %v1571_v2 = vadd.f32 %v1570_v59, %v1555_v29 }
 0x1f6   : > { %v1572_v12 = vadd.f32 %v1571_v2, %v1556_v61 }
 0x207   : > { %v1791_v33 = vpop.f32.mrb[4].mxu1 }
 0x208   : > { %v1530_v35 = vpop.f32.mrb[5].mxu1  ;;  %v1539_v30 = vadd.f32 %v1791_v33, %v1744_v5 }
 0x209   : > { %v1531_v13 = vadd.f32 %v1744_v5, %v1530_v35  ;;  %v1792_v21 = vpop.f32.mrb[6].mxu1 }
 0x20a   : > { %v1533_v14 = vpop.f32.mrb[7].mxu1  ;;  %v1542_v23 = vadd.f32 %v1792_v21, %v1744_v5  ;;  %v1559_v26 = vmax.f32 %v1539_v30, 0.0 }
 0x20b   : > { %v1557_v15 = vmax.f32 %v1531_v13, 0.0  ;;  %v1534_v48 = vadd.f32 %v1744_v5, %v1533_v14 }
 0x20c   : > { %v1560_v50 = vmax.f32 %v1542_v23, 0.0 }
 0x20d   : > { %v1573_v9 = vadd.f32 %v1572_v12, %v1557_v15  ;;  %v1558_v25 = vmax.f32 %v1534_v48, 0.0 }
 0x20f   : > { %v1574_v31 = vadd.f32 %v1573_v9, %v1558_v25 }
 0x211   : > { %v1575_v0 = vadd.f32 %v1574_v31, %v1559_v26 }
 0x213   : > { %v1576_v19 = vadd.f32 %v1575_v0, %v1560_v50 }
 0x215   : > { %v1577_v28 = vrot.slane %v1576_v19, 4 }
 0x217   : > { %v1578_v24 = vadd.f32 %v1577_v28, %v1576_v19 }
 0x219   : > { %v1579_v4 = vrot.slane %v1578_v24, 2 }
 0x21b   : > { %v1580_v36 = vadd.f32 %v1579_v4, %v1578_v24 }
 0x21d   : > { %v1581_v17 = vrot.slane %v1580_v36, 1  ;;  %1588 = sbr.rel (%p1756_p1) target bundleno = 558 (0x22e), region = 40 }
 0x21f   : > { %v1582_v20 = vadd.f32 %v1581_v17, %v1580_v36 }
 0x221   : > { %v1583_v34 = vadd.f32 %v1582_v20, %v1561_v27 }
 0x223   : > { %1584 = vst [vmem:[%s2105_s20] sm:$0x1] %v1583_v34 }
 0x22a   : > { %v1589_v5 = vld [vmem:[%s2105_s20] sm:$0x1] }
 0x22b   : > { %v1590_v40 = vmul.f32 0.00390625, %v1589_v5 }
 0x22d   : > { %1591 = vst [vmem:[%s2105_s20] sm:$0x1] %v1590_v40 }
 0x22e PF: > { %s1757_s26 = sshll.u32 %s1979_s16, 4  ;;  %s1605_s5 = sshll.u32 %s2105_s20, 4  ;;  %s1606_s5 = int_to_ptr.vmem [resolvable:$true] %s1605_s5 }
 0x22f   : > { %s2680_s4 = scalar_lea.hbm %s2733_s3, %s1757_s26  ;;  %s1593_s15 = scalar_lea.sflag [#allocation3], %s183_s29 }
 0x230   : > { %s1897_s9 = scalar_lea.vmem %s1606_s5, 16  ;;  %s2003_s10 = smov [#allocation2]  }
 0x231   : > { %p1898_p2 = scmp.ne.s32.totalorder %s1606_s5, %s1897_s9  ;;  %s1901_s6 = sshll.u32 %s2003_s10, 4  ;;  %s1902_s6 = int_to_ptr.vmem [resolvable:$false] %s1901_s6 }
 0x232   : > { %s1903_s7 = scalar_lea.vmem %s1902_s6, 32  ;;  %p1904_p6 = scmp.lt.s32.totalorder %s1606_s5, %s1902_s6 }
 0x233   : > { %p1899_p4 = pnand %p1898_p2, %p2073_p3  ;;  %p1905_p7 = scmp.lt.s32.totalorder %s1903_s7, %s1897_s9 }
 0x235   : > { %p1900_p5 = pneg %p1899_p4  ;;  %p1906_p8 = por %p1905_p7, %p1904_p6 }
 0x237   : > { %p1907_p10 = pnand %p1906_p8, %p1900_p5 }
 0x239   : > { %1910 = shalt.err (!%p1907_p10)
}
 0x23a   : > { %s1911_s16 = scalar_lea.hbm %s2680_s4, 16  ;;  %s1915_s8 = scalar_lea.hbm %s2733_s3, 32 }
 0x23b   : > { %p1912_p11 = scmp.ne.s32.totalorder %s2680_s4, %s1911_s16  ;;  %p1916_p0 = scmp.lt.u32.totalorder %s2680_s4, %s2733_s3 }
 0x23c   : > { %p1917_p1 = scmp.lt.u32.totalorder %s1915_s8, %s1911_s16  ;;  %p1919_p4 = scmp.lt.u32.totalorder %s1911_s16, %s2680_s4 }
 0x23d   : > { %p1913_p12 = pnand %p1912_p11, %p2073_p3 }
 0x23e   : > { %p1918_p2 = por %p1917_p1, %p1916_p0 }
 0x23f   : > { %p1914_p13 = pneg %p1913_p12 }
 0x240   : > { %p1920_p5 = por %p1919_p4, %p1918_p2 }
 0x242   : > { %p1921_p6 = pnand %p1920_p5, %p1914_p13 }
 0x244   : > { %1924 = shalt.err (!%p1921_p6)
}
 0x245   : > { %1803 = dma.vmem_to_hbm [thread:$0]  (%p2073_p3), %s1606_s5, 16, %s2680_s4, %s1593_s15  }
 0x246 PF: > { %p1809_p7 = scmp.ge.s32.totalorder %s1991_s19, 2  ;;  %s1617_s26 = sand.u32 1, %s1963_s12  }
 0x247   : > { %s1618_s27 = scalar_lea.sflag [#allocation3], %s1617_s26 }
 0x248   : > { %p1806_p8 = pnand %p1809_p7, %p2083_p9 }
 0x24a   : > { %1958 = dma.done.wait (!%p1806_p8), %s1618_s27, 16  }
 0x24b   : > { %1960 = vsyncadd (!%p1806_p8), %s1618_s27, 4294967280  ;;  %s16_s19 = sadd.s32 1, %s1991_s19   ;;  %s2746_s12 = smov %s1967_s13 }
 0x24c   : > { %p13_p10 = scmp.ge.s32.totalorder %s16_s19, 6   ;;  %s2747_s13 = smov %s1971_s14 }
 0x24d   : > { %s2748_s14 = smov %s2091_s28  ;;  %s2749_s15 = smov %s1983_s17 }
 0x24e   : > { %s2750_s16 = smov %s1987_s18  ;;  %s2751_s17 = smov %s2754_s22 }
 0x24f   : > { %s2752_s18 = smov %s2758_s23  ;;  %15 = sbr.rel (!%p13_p10) target bundleno = 5 (0x5), region = 75 }
 0x256   :  { %1622 = vsyncpa [#allocation3], 1 }
 0x257   :  { %1624 = vsyncpa [#allocation3 + $0x1], 1 }

</bundles_post_ra>
